<compile_context>
chip_gen: v7x
topology: tpu7x:2x2x1
jax: 0.10.0
libtpu: 0.0.40
codegen_flags: <defaults>
</compile_context>

<pallas_src>
import jax
import jax.numpy as jnp
from jax.experimental import pallas as pl
from jax.experimental.pallas import tpu as pltpu


# ------------------------------ Pallas kernel ------------------------------- #

def _preact_conv3x3_kernel(x_ref, wt_ref, b_ref, o_ref):
    """y[h, w*Cout+c] = sum_{dy,dx,ci} relu(x)[h+dy,(w+dx)*Cin+ci] * W[dy,dx,ci,c] + b[c]

    x_ref : (H+2, (W+2)*Cin)        zero-padded image, (w, ci) flattened into lanes
    wt_ref: (3, (W+2)*Cin, W*Cout)  banded (block-Toeplitz) weights, one slab per dy
    b_ref : (1, W*Cout)             bias tiled along W
    o_ref : (H, W*Cout)             lane-dense output block
    """
    H = o_ref.shape[0]
    kh = wt_ref.shape[0]
    # pre-activation ReLU, applied once per loaded element
    x = jnp.maximum(x_ref[...], 0.0)
    acc = jnp.dot(x[0:H, :], wt_ref[0], preferred_element_type=jnp.float32)
    for dy in range(1, kh):                       # static 3-iter unroll
        acc = acc + jnp.dot(x[dy:dy + H, :], wt_ref[dy],
                            preferred_element_type=jnp.float32)
    o_ref[...] = (acc + b_ref[...]).astype(o_ref.dtype)


# ------------------------------ wrapper / glue ------------------------------- #

def _banded_weights(w_hwio, W):
    """(KH, KW, Cin, Cout) HWIO filter -> (KH, (W+2)*Cin, W*Cout) banded GEMM weights.

    wt[dy, (w+dx)*Cin + ci, w*Cout + c] = w_hwio[dy, dx, ci, c], zeros elsewhere.
    Built once per call (weight-side, O(W^2*Cin*Cout) — tiny at these shapes).
    """
    KH, KW, Cin, Cout = w_hwio.shape
    Wp = W + KW - 1                                   # padded width (pad=1, 3x3)
    p = jnp.arange(Wp)
    w_out = jnp.arange(W)
    dx = jnp.arange(KW)
    onehot = (p[None, None, :] == (w_out[:, None, None] + dx[None, :, None]))
    onehot = onehot.astype(w_hwio.dtype)              # (W, KW, Wp)
    wt = jnp.einsum('wxp,yxio->ypiwo', onehot, w_hwio)  # (KH, Wp, Cin, W, Cout)
    return wt.reshape(KH, Wp * Cin, W * Cout)


def convblock_forward(x_nchw, w_hwio, b):
    """ConvBlock.forward with module defaults.  Input/output NCHW (PyTorch layout)."""
    N, Cin, H, W = x_nchw.shape
    KH, KW, _, Cout = w_hwio.shape
    Wp = W + KW - 1

    # NCHW -> NHWC (single wrapper layout op; an NHWC-native pipeline skips it)
    x = jnp.transpose(x_nchw, (0, 2, 3, 1))
    # zero-pad spatial by 1 and flatten (W+2, Cin) into the lane dimension
    xp = jnp.pad(x, ((0, 0), (1, 1), (1, 1), (0, 0)))
    xp = xp.reshape(N, H + KH - 1, Wp * Cin)

    wt = _banded_weights(w_hwio, W)                   # (3, (W+2)*Cin, W*Cout)
    b_row = jnp.tile(b, (W,)).reshape(1, W * Cout)    # (1, W*Cout)

    flops = 2 * N * KH * H * (Wp * Cin) * (W * Cout)
    bytes_accessed = 4 * (xp.size + wt.size + b_row.size + N * H * W * Cout)

    out2d = pl.pallas_call(
        _preact_conv3x3_kernel,
        out_shape=jax.ShapeDtypeStruct((N, H, W * Cout), jnp.float32),
        grid_spec=pltpu.PrefetchScalarGridSpec(
            num_scalar_prefetch=0,
            grid=(N,),          # >= 2 parallel steps -> both v7x TCs usable
            in_specs=[
                pl.BlockSpec((None, H + KH - 1, Wp * Cin), lambda n: (n, 0, 0)),
                pl.BlockSpec((KH, Wp * Cin, W * Cout), lambda n: (0, 0, 0)),
                pl.BlockSpec((1, W * Cout), lambda n: (0, 0)),
            ],
            out_specs=pl.BlockSpec((None, H, W * Cout), lambda n: (n, 0, 0)),
        ),
        compiler_params=pltpu.CompilerParams(
            dimension_semantics=("parallel",),
            vmem_limit_bytes=32 * 1024 * 1024,        # explicit; safe on v5e/v6e/v7x
        ),
        cost_estimate=pl.CostEstimate(
            flops=flops, transcendentals=0, bytes_accessed=bytes_accessed),
    )(xp, wt, b_row)

    out = out2d.reshape(N, H, W, Cout)
    return jnp.transpose(out, (0, 3, 1, 2))           # -> NCHW


# ------------------------------ pure-JAX reference --------------------------- #

def convblock_ref(x_nchw, w_hwio, b):
    x = jnp.transpose(x_nchw, (0, 2, 3, 1))
    y = jax.lax.conv_general_dilated(
        jnp.maximum(x, 0.0), w_hwio, window_strides=(1, 1),
        padding=((1, 1), (1, 1)),
        dimension_numbers=("NHWC", "HWIO", "NHWC"))
    y = y + b
    return jnp.transpose(y, (0, 3, 1, 2))


# ----------------------------------- main ------------------------------------ #

if __name__ == "__main__":
    # TODO(synk): spectral_norm / InstanceNorm / BatchNorm / Dropout2d /
    # upsample / downsample branches are Identity (or absent) under the module
    # defaults used here and are not implemented.
    N, C_in, C_out, H, W = 2, 4, 8, 16, 16

    key = jax.random.PRNGKey(0)
    kx, kw, kb = jax.random.split(key, 3)

    x = jax.random.normal(kx, (N, C_in, H, W), dtype=jnp.float32)       # NCHW
    # HWIO filter (PyTorch Conv2d OIHW weight maps via transpose(2, 3, 1, 0))
    w = 0.1 * jax.random.normal(kw, (3, 3, C_in, C_out), dtype=jnp.float32)
    b = 0.1 * jax.random.normal(kb, (C_out,), dtype=jnp.float32)

    out = jax.jit(convblock_forward)(x, w, b)
    out = jax.block_until_ready(out)

    ref = jax.block_until_ready(convblock_ref(x, w, b))

    assert out.shape == (N, C_out, H, W), out.shape
    assert jnp.allclose(out, ref, atol=2e-4, rtol=2e-4), \
        float(jnp.max(jnp.abs(out - ref)))

    print("KERNEL_OK")
</pallas_src>

<mosaic_0001>
module attributes {stable_mosaic.version = 11 : i64} {
  func.func @_preact_conv3x3_kernel(%arg0: i32, %arg1: memref<1x18x72xf32, #tpu.memory_space<vmem>>, %arg2: memref<3x72x128xf32, #tpu.memory_space<vmem>>, %arg3: memref<1x128xf32, #tpu.memory_space<vmem>>, %arg4: memref<1x16x128xf32, #tpu.memory_space<vmem>>) attributes {dimension_semantics = [#tpu.dimension_semantics<parallel>], iteration_bounds = array<i64: 2>, scalar_prefetch = 0 : i64, scratch_operands = 0 : i64, tpu.core_type = #tpu.core_type<tc>, window_params = [{transform_indices = @transform_0, window_bounds = array<i64: 1, 18, 72>}, {pipeline_mode = #tpu.pipeline_mode<synchronous>, transform_indices = @transform_1, window_bounds = array<i64: 3, 72, 128>}, {pipeline_mode = #tpu.pipeline_mode<synchronous>, transform_indices = @transform_2, window_bounds = array<i64: 1, 128>}, {transform_indices = @transform_3, window_bounds = array<i64: 1, 16, 128>}]} {
    %c0 = arith.constant 0 : index
    %c0_0 = arith.constant 0 : index
    %c0_1 = arith.constant 0 : index
    %0 = vector.load %arg1[%c0, %c0_0, %c0_1] : memref<1x18x72xf32, #tpu.memory_space<vmem>>, vector<1x18x72xf32>
    %1 = vector.shape_cast %0 : vector<1x18x72xf32> to vector<18x72xf32>
    %cst = arith.constant 0.000000e+00 : f32
    %2 = vector.broadcast %cst : f32 to vector<18x72xf32>
    %3 = arith.maximumf %1, %2 : vector<18x72xf32>
    %4 = vector.extract_strided_slice %3 {offsets = [0, 0], sizes = [16, 72], strides = [1, 1]} : vector<18x72xf32> to vector<16x72xf32>
    %c0_2 = arith.constant 0 : index
    %c0_3 = arith.constant 0 : index
    %c0_4 = arith.constant 0 : index
    %5 = vector.load %arg2[%c0_2, %c0_3, %c0_4] : memref<3x72x128xf32, #tpu.memory_space<vmem>>, vector<1x72x128xf32>
    %6 = vector.shape_cast %5 : vector<1x72x128xf32> to vector<72x128xf32>
    %cst_5 = arith.constant dense<0.000000e+00> : vector<16x128xf32>
    %7 = tpu.matmul %4, %6, %cst_5 {dimension_numbers = #tpu.dot_dimension_numbers<[1], [0], [0], [1], [0, 0, 1, 1], [], []>} : vector<16x72xf32>, vector<72x128xf32>, vector<16x128xf32> -> vector<16x128xf32>
    %8 = vector.extract_strided_slice %3 {offsets = [1, 0], sizes = [16, 72], strides = [1, 1]} : vector<18x72xf32> to vector<16x72xf32>
    %c1 = arith.constant 1 : index
    %c0_6 = arith.constant 0 : index
    %c0_7 = arith.constant 0 : index
    %9 = vector.load %arg2[%c1, %c0_6, %c0_7] : memref<3x72x128xf32, #tpu.memory_space<vmem>>, vector<1x72x128xf32>
    %10 = vector.shape_cast %9 : vector<1x72x128xf32> to vector<72x128xf32>
    %cst_8 = arith.constant dense<0.000000e+00> : vector<16x128xf32>
    %11 = tpu.matmul %8, %10, %cst_8 {dimension_numbers = #tpu.dot_dimension_numbers<[1], [0], [0], [1], [0, 0, 1, 1], [], []>} : vector<16x72xf32>, vector<72x128xf32>, vector<16x128xf32> -> vector<16x128xf32>
    %12 = arith.addf %7, %11 : vector<16x128xf32>
    %13 = vector.extract_strided_slice %3 {offsets = [2, 0], sizes = [16, 72], strides = [1, 1]} : vector<18x72xf32> to vector<16x72xf32>
    %c2 = arith.constant 2 : index
    %c0_9 = arith.constant 0 : index
    %c0_10 = arith.constant 0 : index
    %14 = vector.load %arg2[%c2, %c0_9, %c0_10] : memref<3x72x128xf32, #tpu.memory_space<vmem>>, vector<1x72x128xf32>
    %15 = vector.shape_cast %14 : vector<1x72x128xf32> to vector<72x128xf32>
    %cst_11 = arith.constant dense<0.000000e+00> : vector<16x128xf32>
    %16 = tpu.matmul %13, %15, %cst_11 {dimension_numbers = #tpu.dot_dimension_numbers<[1], [0], [0], [1], [0, 0, 1, 1], [], []>} : vector<16x72xf32>, vector<72x128xf32>, vector<16x128xf32> -> vector<16x128xf32>
    %17 = arith.addf %12, %16 : vector<16x128xf32>
    %c0_12 = arith.constant 0 : index
    %c0_13 = arith.constant 0 : index
    %18 = vector.load %arg3[%c0_12, %c0_13] : memref<1x128xf32, #tpu.memory_space<vmem>>, vector<1x128xf32>
    %19 = vector.broadcast %18 : vector<1x128xf32> to vector<16x128xf32>
    %20 = arith.addf %17, %19 : vector<16x128xf32>
    %c0_14 = arith.constant 0 : index
    %c0_15 = arith.constant 0 : index
    %c0_16 = arith.constant 0 : index
    %21 = vector.load %arg4[%c0_14, %c0_15, %c0_16] : memref<1x16x128xf32, #tpu.memory_space<vmem>>, vector<1x16x128xf32>
    %22 = vector.shape_cast %21 : vector<1x16x128xf32> to vector<16x128xf32>
    %23 = vector.shape_cast %20 : vector<16x128xf32> to vector<1x16x128xf32>
    tpu.vector_store %arg4[%c0_14, %c0_15, %c0_16], %23 {strides = array<i32>} : memref<1x16x128xf32, #tpu.memory_space<vmem>>, vector<1x16x128xf32>,
    return
  }
  func.func @transform_0(%arg0: i32) -> (i32, i32, i32) {
    %c0_i32 = arith.constant 0 : i32
    %c0_i32_0 = arith.constant 0 : i32
    %c0_i32_1 = arith.constant 0 : i32
    return %arg0, %c0_i32, %c0_i32_0 : i32, i32, i32
  }
  func.func @transform_1(%arg0: i32) -> (i32, i32, i32) {
    %c0_i32 = arith.constant 0 : i32
    %c0_i32_0 = arith.constant 0 : i32
    %c0_i32_1 = arith.constant 0 : i32
    %c0_i32_2 = arith.constant 0 : i32
    return %c0_i32, %c0_i32_0, %c0_i32_1 : i32, i32, i32
  }
  func.func @transform_2(%arg0: i32) -> (i32, i32) {
    %c0_i32 = arith.constant 0 : i32
    %c0_i32_0 = arith.constant 0 : i32
    %c0_i32_1 = arith.constant 0 : i32
    return %c0_i32, %c0_i32_0 : i32, i32
  }
  func.func @transform_3(%arg0: i32) -> (i32, i32, i32) {
    %c0_i32 = arith.constant 0 : i32
    %c0_i32_0 = arith.constant 0 : i32
    %c0_i32_1 = arith.constant 0 : i32
    return %arg0, %c0_i32, %c0_i32_0 : i32, i32, i32
  }
}

</mosaic_0001>

<bundles_post_ra>
// kernel: tile.8
= control target key start
LH: loop header
LB: loop body
LE: loop exit
PB: predicated region body
PF: predicated region fallthrough
CT: control target
= control target key end

     0   :  { %s28_s0 = inlined_call_operand.vmem [shape: f32[8], index: 0, kind: input, shape index: {}]   ;;  %s29_s1 = inlined_call_operand.vmem [shape: f32[16,8], index: 1, kind: output, shape index: {}]  }
   0x1   :  { %v4_v0 = vld [vmem:[%s28_s0] ss:$0 sm:$0xff] }
   0x2   :  { %5 = vst [vmem:[%s29_s1] sm:$0xff] %v4_v0  ;;  %8 = vst [vmem:[%s29_s1 + $0x8] sm:$0xff] %v4_v0 }

// kernel: tile.9
= control target key start
LH: loop header
LB: loop body
LE: loop exit
PB: predicated region body
PF: predicated region fallthrough
CT: control target
= control target key end

     0   :  { %s131_s10 = smov 120   ;;  %s132_s11 = smov 104   ;;  %vm3_vm0 = vcmask 64512   ;;  %vm9_vm1 = vcmask 1048512   ;;  %vm15_vm2 = vcmask 982912   ;;  %vm21_vm3 = vcmask 917312   ;;  %s207_s0 = inlined_call_operand.vmem [shape: f32[16,8], index: 0, kind: input, shape index: {}]   ;;  %s208_s1 = inlined_call_operand.vmem [shape: f32[1,128], index: 1, kind: output, shape index: {}]  }
   0x1   :  { %v101_v0 = vld [vmem:[%s207_s0 + $0xf] sm:$0x1]   ;;  %v103_v1 = vld [vmem:[%s207_s0 + $0xd] sm:$0x1]   ;;  %v102_v2 = vld [vmem:[%s207_s0 + $0xe] sm:$0x1]  }
   0x2   :  { %7 = vrot.lane.b32.xlu0 %v101_v0, %s131_s10  ;;  %19 = vrot.lane.b32.xlu1 %v103_v1, %s132_s11  ;;  %v104_v3 = vld [vmem:[%s207_s0 + $0xc] sm:$0x1]   ;;  %s133_s16 = smov 112   ;;  %s134_s17 = smov 96   ;;  %v105_v4 = vld [vmem:[%s207_s0 + $0xb] sm:$0x1]  }
   0x3   :  { %v106_v5 = vld [vmem:[%s207_s0 + $0xa] sm:$0x1]   ;;  %v2_v6 = vld [vmem:[%s207_s0] sm:$0x1]   ;;  %s135_s24 = smov 88   ;;  %s136_s25 = smov 80  }
   0x4   :  { %4 = vst.msk [vmem:[#allocation0] sm:$0x1] %vm3_vm0, %v2_v6   ;;  %v107_v7 = vld [vmem:[%s207_s0 + $0x9] sm:$0x1]   ;;  %v108_v8 = vld [vmem:[%s207_s0 + $0x8] sm:$0x1]  }
   0x5   :  { %s137_s30 = smov 72   ;;  %s138_s2 = smov 64   ;;  %v109_v9 = vld [vmem:[%s207_s0 + $0x7] sm:$0x1]   ;;  %v110_v10 = vld [vmem:[%s207_s0 + $0x6] sm:$0x1]  }
   0x6   :  { %13 = vrot.lane.b32.xlu0 %v102_v2, %s133_s16  ;;  %25 = vrot.lane.b32.xlu1 %v104_v3, %s134_s17  ;;  %s139_s7 = smov 56   ;;  %s140_s8 = smov 48   ;;  %v111_v11 = vld [vmem:[%s207_s0 + $0x5] sm:$0x1]   ;;  %v112_v12 = vld [vmem:[%s207_s0 + $0x4] sm:$0x1]  }
   0x7   :  { %s141_s13 = smov 40   ;;  %s142_s14 = smov 32   ;;  %v113_v13 = vld [vmem:[%s207_s0 + $0x3] sm:$0x1]   ;;  %v114_v14 = vld [vmem:[%s207_s0 + $0x2] sm:$0x1]  }
   0x8   :  { %s143_s19 = smov 24   ;;  %s144_s20 = smov 16   ;;  %v115_v15 = vld [vmem:[%s207_s0 + $0x1] sm:$0x1]   ;;  %vm27_vm4 = vcmask 851712   ;;  %vm33_vm5 = vcmask 786112  }
   0x9   :  { %s145_s0 = smov 8   ;;  %vm39_vm6 = vcmask 720512   ;;  %vm45_vm7 = vcmask 654912   ;;  %vm51_vm8 = vcmask 589312   ;;  %vm57_vm9 = vcmask 523712  }
   0xa   :  { %31 = vrot.lane.b32.xlu0 %v105_v4, %s135_s24  ;;  %37 = vrot.lane.b32.xlu1 %v106_v5, %s136_s25  ;;  %vm63_vm10 = vcmask 458112   ;;  %vm69_vm11 = vcmask 392512   ;;  %vm75_vm12 = vcmask 326912   ;;  %vm81_vm13 = vcmask 261312  }
   0xb   :  { %vm87_vm14 = vcmask 195712   ;;  %vm93_vm15 = vcmask 130112  }
   0xe   :  { %43 = vrot.lane.b32.xlu0 %v107_v7, %s137_s30  ;;  %49 = vrot.lane.b32.xlu1 %v108_v8, %s138_s2 }
  0x12   :  { %55 = vrot.lane.b32.xlu0 %v109_v9, %s139_s7  ;;  %61 = vrot.lane.b32.xlu1 %v110_v10, %s140_s8 }
  0x16   :  { %67 = vrot.lane.b32.xlu0 %v111_v11, %s141_s13  ;;  %73 = vrot.lane.b32.xlu1 %v112_v12, %s142_s14 }
  0x1a   :  { %79 = vrot.lane.b32.xlu0 %v113_v13, %s143_s19  ;;  %85 = vrot.lane.b32.xlu1 %v114_v14, %s144_s20 }
  0x1e   :  { %91 = vrot.lane.b32.xlu0 %v115_v15, %s145_s0 }
  0x74   :  { %v8_v16 = vpop.permute.xlu0 %7   ;;  %v20_v17 = vpop.permute.xlu1 %19  }
  0x75   :  { %10 = vst.msk [vmem:[#allocation0] sm:$0x1] %vm9_vm1, %v8_v16  }
  0x78   :  { %v14_v18 = vpop.permute.xlu0 %13   ;;  %v26_v19 = vpop.permute.xlu1 %25  }
  0x79   :  { %16 = vst.msk [vmem:[#allocation0] sm:$0x1] %vm15_vm2, %v14_v18  }
  0x7a   :  { %22 = vst.msk [vmem:[#allocation0] sm:$0x1] %vm21_vm3, %v20_v17  }
  0x7b   :  { %28 = vst.msk [vmem:[#allocation0] sm:$0x1] %vm27_vm4, %v26_v19  }
  0x7c   :  { %v32_v20 = vpop.permute.xlu0 %31   ;;  %v38_v21 = vpop.permute.xlu1 %37  }
  0x7d   :  { %34 = vst.msk [vmem:[#allocation0] sm:$0x1] %vm33_vm5, %v32_v20  }
  0x7e   :  { %40 = vst.msk [vmem:[#allocation0] sm:$0x1] %vm39_vm6, %v38_v21  }
  0x80   :  { %v44_v22 = vpop.permute.xlu0 %43   ;;  %v50_v23 = vpop.permute.xlu1 %49  }
  0x81   :  { %46 = vst.msk [vmem:[#allocation0] sm:$0x1] %vm45_vm7, %v44_v22  }
  0x82   :  { %52 = vst.msk [vmem:[#allocation0] sm:$0x1] %vm51_vm8, %v50_v23  }
  0x84   :  { %v56_v24 = vpop.permute.xlu0 %55   ;;  %v62_v25 = vpop.permute.xlu1 %61  }
  0x85   :  { %58 = vst.msk [vmem:[#allocation0] sm:$0x1] %vm57_vm9, %v56_v24  }
  0x86   :  { %64 = vst.msk [vmem:[#allocation0] sm:$0x1] %vm63_vm10, %v62_v25  }
  0x88   :  { %v68_v26 = vpop.permute.xlu0 %67   ;;  %v74_v27 = vpop.permute.xlu1 %73  }
  0x89   :  { %70 = vst.msk [vmem:[#allocation0] sm:$0x1] %vm69_vm11, %v68_v26  }
  0x8a   :  { %76 = vst.msk [vmem:[#allocation0] sm:$0x1] %vm75_vm12, %v74_v27  }
  0x8c   :  { %v80_v28 = vpop.permute.xlu0 %79   ;;  %v86_v29 = vpop.permute.xlu1 %85  }
  0x8d   :  { %82 = vst.msk [vmem:[#allocation0] sm:$0x1] %vm81_vm13, %v80_v28  }
  0x8e   :  { %88 = vst.msk [vmem:[#allocation0] sm:$0x1] %vm87_vm14, %v86_v29  }
  0x90   :  { %v92_v30 = vpop.permute.xlu0 %91  }
  0x91   :  { %94 = vst.msk [vmem:[#allocation0] sm:$0x1] %vm93_vm15, %v92_v30  }
  0x98   :  { %v98_v31 = vld [vmem:[#allocation0] sm:$0x1] }
  0x99   :  { %100 = vst [vmem:[%s208_s1] sm:$0x1] %v98_v31 }

// kernel: convblock_forward.1
= control target key start
LH: loop header
LB: loop body
LE: loop exit
PB: predicated region body
PF: predicated region fallthrough
CT: control target
= control target key end

     0   :  { %s748_s12 = smov 0   ;;  %s868_s0 = inlined_call_operand.vmem [shape: f32[2,18,72], index: 0, kind: input, shape index: {}]   ;;  %s869_s1 = inlined_call_operand.vmem [shape: f32[3,72,128], index: 1, kind: input, shape index: {}]   ;;  %s870_s2 = inlined_call_operand.vmem [shape: f32[1,128], index: 2, kind: input, shape index: {}]   ;;  %s871_s3 = inlined_call_operand.vmem [shape: f32[2,16,128], index: 3, kind: output, shape index: {}]  }
   0x1 LB: > { %s527_s13 = sadd.s32 4294967295, %s726_s12   ;;  %p531_p0 = scmp.ge.s32.totalorder %s726_s12, 1  ;;  %s726_s12 = sphi %s748_s12, %s13_s12  }
   0x2   : > { %p137_p1 = scmp.lt.s32.totalorder %s726_s12, 3 }
   0x4   : > { %p138_p2 = pnand %p531_p0, %p137_p1 }
   0x5   : > { %v177_v0 = vld [vmem:[%s869_s1] sm:$0xff] (!%p138_p2)  ;;  %v178_v1 = vld [vmem:[%s869_s1 + $0x8] sm:$0xff] (!%p138_p2)  ;;  %v179_v2 = vld [vmem:[%s869_s1 + $0x10] sm:$0xff] (!%p138_p2)  ;;  %p161_p3 = scmp.lt.s32.totalorder (!%p138_p2), %s527_s13, 1  ;;  %vm205_vm0 = vcmask (!%p138_p2), 588800   ;;  %vm199_vm1 = vcmask (!%p138_p2), 1046528  }
   0x6   : > { %141 = sbr.rel (%p138_p2) target bundleno = 262 (0x106), region = 32  ;;  %v675_v3 = vpack.c.bf16 (!%p138_p2), %v178_v1, %v177_v0  ;;  %v180_v4 = vld [vmem:[%s869_s1 + $0x18] sm:$0xff] (!%p138_p2)  ;;  %v181_v6 = vld [vmem:[%s869_s1 + $0x20] sm:$0xff] (!%p138_p2)  ;;  %v182_v7 = vld [vmem:[%s869_s1 + $0x28] sm:$0xff] (!%p138_p2)  ;;  %vm374_vm2 = vcmask (!%p138_p2), 1045504  }
   0x7   : > { %v679_v5 = vpack.c.bf16 (!%p138_p2), %v180_v4, %v179_v2  ;;  %v535_v8 = vld [vmem:[%s869_s1 + $0x48] sm:$0xff] (!%p138_p2)  ;;  %v536_v9 = vld [vmem:[%s869_s1 + $0x50] sm:$0xff] (!%p138_p2)  ;;  %v537_v11 = vld [vmem:[%s869_s1 + $0x58] sm:$0xff] (!%p138_p2)  ;;  %v683_v13 = vpack.c.bf16 (!%p138_p2), %v182_v7, %v181_v6 }
   0x8   : > { %676 = vmatprep.subr.bf16.mxu0 (!%p138_p2), %v675_v3  ;;  %v659_v10 = vpack.c.bf16 (!%p138_p2), %v536_v9, %v535_v8  ;;  %v538_v12 = vld [vmem:[%s869_s1 + $0x60] sm:$0xff] (!%p138_p2)  ;;  %v539_v15 = vld [vmem:[%s869_s1 + $0x68] sm:$0xff] (!%p138_p2)  ;;  %v183_v16 = vld [vmem:[%s869_s1 + $0x30] sm:$0xff] (!%p138_p2) }
   0x9   : > { %678 = vmatpush3.bf16.msra.mxu0 (!%p138_p2), %v675_v3  ;;  %v663_v14 = vpack.c.bf16 (!%p138_p2), %v538_v12, %v537_v11  ;;  %v184_v17 = vld [vmem:[%s869_s1 + $0x38] sm:$0xff] (!%p138_p2)  ;;  %v540_v18 = vld [vmem:[%s869_s1 + $0x70] sm:$0xff] (!%p138_p2)  ;;  %v542_v26 = vld [vmem:[%s869_s1 + $0x80] sm:$0xff] (!%p138_p2) }
   0xa   : > { %680 = vmatprep.subr.bf16.mxu0 (!%p138_p2), %v679_v5  ;;  %660 = vmatprep.subr.bf16.mxu1 (!%p138_p2), %v659_v10  ;;  %v667_v23 = vpack.c.bf16 (!%p138_p2), %v540_v18, %v539_v15  ;;  %v687_v24 = vpack.c.bf16 (!%p138_p2), %v184_v17, %v183_v16  ;;  %v541_v25 = vld [vmem:[%s869_s1 + $0x78] sm:$0xff] (!%p138_p2)  ;;  %v185_v33 = vld [vmem:[%s869_s1 + $0x40] sm:$0xff] (!%p138_p2)  ;;  %v548_v34 = vld [vmem:[%s869_s1 + $0x90] sm:$0xff] (!%p138_p2) }
   0xb   : > { %662 = vmatpush3.bf16.msra.mxu1 (!%p138_p2), %v659_v10  ;;  %v671_v30 = vpack.c.bf16 (!%p138_p2), %v542_v26, %v541_v25  ;;  %v549_v35 = vld [vmem:[%s869_s1 + $0x98] sm:$0xff] (!%p138_p2)  ;;  %v550_v38 = vld [vmem:[%s869_s1 + $0xa0] sm:$0xff] (!%p138_p2)  ;;  %v551_v39 = vld [vmem:[%s869_s1 + $0xa8] sm:$0xff] (!%p138_p2) }
   0xc   : > { %664 = vmatprep.subr.bf16.mxu1 (!%p138_p2), %v663_v14  ;;  %v691_v40 = vpack.c.bf16 (!%p138_p2), %v549_v35, %v548_v34  ;;  %v543_v41 = vld [vmem:[%s869_s1 + $0x88] sm:$0xff] (!%p138_p2)  ;;  %v695_v43 = vpack.c.bf16 (!%p138_p2), %v551_v39, %v550_v38  ;;  %v552_v45 = vld [vmem:[%s869_s1 + $0xb0] sm:$0xff] (!%p138_p2)  ;;  %v553_v46 = vld [vmem:[%s869_s1 + $0xb8] sm:$0xff] (!%p138_p2) }
   0xd   : > { %s873_s13 = smov (!%p161_p3, %s527_s13), 1  ;;  %682 = vmatpush3.bf16.msra.mxu0 %v679_v5  ;;  %v699_v48 = vpack.c.bf16 %v553_v46, %v552_v45  ;;  %v554_v49 = vld [vmem:[%s869_s1 + $0xc0] sm:$0xff]  ;;  %v555_v50 = vld [vmem:[%s869_s1 + $0xc8] sm:$0xff]  ;;  %v556_v52 = vld [vmem:[%s869_s1 + $0xd0] sm:$0xff] }
   0xe   : > { %s711_s30 = smul.u32 24, %s873_s13  ;;  %684 = vmatprep.subr.bf16.mxu0 %v683_v13  ;;  %v703_v51 = vpack.c.bf16 %v555_v50, %v554_v49  ;;  %s562_s22 = sshll.u32 %s873_s13, 4  ;;  %v559_v58 = vld [vmem:[%s870_s2] ss:$0 sm:$0xff] }
   0xf   : > { %666 = vmatpush3.bf16.msra.mxu1 %v663_v14  ;;  %s170_s27 = scalar_lea.vmem %s871_s3, %s562_s22 }
  0x10   : > { %s165_s18 = scalar_lea.vmem %s868_s0, %s711_s30  ;;  %668 = vmatprep.subr.bf16.mxu1 %v667_v23 }
  0x11   : > { %v171_v19 = vld [vmem:[%s165_s18] sm:$0xff]  ;;  %v172_v20 = vld [vmem:[%s165_s18 + $0x8] sm:$0xff]  ;;  %v173_v27 = vld [vmem:[%s165_s18 + $0x10] sm:$0x3]  ;;  %686 = vmatpush3.bf16.msra.mxu0 %v683_v13 }
  0x12   : > { %v174_v21 = vmax.f32 %v171_v19, 0.0  ;;  %v804_v22 = vmax.f32 %v172_v20, 0.0  ;;  %688 = vmatprep.subr.bf16.mxu0 %v687_v24  ;;  %v176_v32 = vmax.f32 %v173_v27, 0.0 }
  0x13   : > { %670 = vmatpush3.bf16.msra.mxu1 %v667_v23 }
  0x14   : > { %635 = vmatprep.mubr.msk.f32.mxu0 %vm205_vm0, %v174_v21  ;;  %v200_v28 = vrot.slane %v174_v21, 1  ;;  %v201_v29 = vrot.slane %v804_v22, 1  ;;  %v375_v36 = vrot.slane %v174_v21, 2  ;;  %v376_v37 = vrot.slane %v804_v22, 2  ;;  %672 = vmatprep.subr.bf16.mxu1 %v671_v30 }
  0x15   : > { %690 = vmatpush3.bf16.msra.mxu0 %v687_v24  ;;  %v203_v42 = vrot.slane %v176_v32, 1  ;;  %v378_v53 = vrot.slane %v176_v32, 2 }
  0x16   : > { %v202_v31 = vsel %vm199_vm1, %v200_v28, %v201_v29  ;;  %633 = vmatprep.subr.mxu0 %v185_v33  ;;  %v377_v44 = vsel %vm374_vm2, %v375_v36, %v376_v37 }
  0x17   : > { %614 = vmatprep.mubr.msk.f32.mxu1 %vm205_vm0, %v202_v31  ;;  %674 = vmatpush3.bf16.msra.mxu1 %v671_v30  ;;  %v204_v47 = vsel %vm199_vm1, %v201_v29, %v203_v42  ;;  %v379_v54 = vsel %vm374_vm2, %v376_v37, %v378_v53 }
  0x18   : > { %612 = vmatprep.subr.mxu1 %v543_v41 }
  0x19   : > { %634 = vmatpush3.msra.mxu0 %v185_v33 }
  0x1a   : > { %692 = vmatprep.subr.bf16.mxu0 %v691_v40  ;;  %636 = vmatmul.mubr.msk.f32.vlgmr.msra.gmra.mrb[0].mxu0 %vm205_vm0, %v804_v22 }
  0x1b   : > { %694 = vmatpush3.bf16.msra.mxu0 %v691_v40  ;;  %656 = vmatprep.mubr.msk.f32.mxu0 %vm205_vm0, %v377_v44 }
  0x1c   : > { %696 = vmatprep.subr.bf16.mxu0 %v695_v43  ;;  %613 = vmatpush3.msra.mxu1 %v543_v41 }
  0x1d   : > { %615 = vmatmul.mubr.msk.f32.vlgmr.msra.gmra.mrb[0].mxu1 %vm205_vm0, %v204_v47 }
  0x1f   : > { %698 = vmatpush3.bf16.msra.mxu0 %v695_v43 }
  0x20   : > { %700 = vmatprep.subr.bf16.mxu0 %v699_v48 }
  0x23   : > { %702 = vmatpush3.bf16.msra.mxu0 %v699_v48 }
  0x24   : > { %704 = vmatprep.subr.bf16.mxu0 %v703_v51 }
  0x27   : > { %706 = vmatpush3.bf16.msra.mxu0 %v703_v51 }
  0x28   : > { %654 = vmatprep.subr.mxu0 %v556_v52 }
  0x2b   : > { %655 = vmatpush3.msra.mxu0 %v556_v52 }
  0x2c   : > { %657 = vmatmul.mubr.msk.f32.vlgmr.msra.gmra.mrb[0].mxu0 %vm205_vm0, %v379_v54 }
  0xf0   : > { %v616_v55 = vpop.f32.mrb[0].mxu1 }
  0xf1   : > { %v276_v56 = vpop.f32.mrb[1].mxu1 }
  0xff   : > { %v658_v57 = vpop.f32.mrb[0].mxu0 }
 0x100   : > { %v707_v59 = vadd.f32 %v658_v57, %v616_v55  ;;  %v450_v60 = vpop.f32.mrb[1].mxu0 }
 0x101   : > { %v708_v61 = vadd.f32 %v450_v60, %v276_v56 }
 0x102   : > { %v469_v62 = vadd.f32 %v707_v59, %v559_v58 }
 0x103   : > { %v468_v63 = vadd.f32 %v708_v61, %v559_v58 }
 0x104   : > { %471 = vst [vmem:[%s170_s27 + $0x8] sm:$0xff] %v469_v62 }
 0x105   : > { %470 = vst [vmem:[%s170_s27] sm:$0xff] %v468_v63 }
 0x106 PF: > { %s13_s12 = sadd.s32 1, %s726_s12  }
 0x107   : > { %p10_p4 = scmp.ge.s32.totalorder %s13_s12, 4  }
 0x109   :  { %12 = sbr.rel (!%p10_p4) target bundleno = 1 (0x1), region = 64 }

</bundles_post_ra>
